<compile_context>
chip_gen: v7x
topology: tpu7x:2x2x1
jax: 0.10.0
libtpu: 0.0.40
codegen_flags: <defaults>
</compile_context>

<pallas_src>
import functools
import math

import jax
import jax.numpy as jnp
from jax import lax
from jax.experimental import pallas as pl
from jax.experimental.pallas import tpu as pltpu


def _round_up(x, m):
    return ((x + m - 1) // m) * m


def _moe_gate_kernel(x_ref, wt_ref, out_ref, *, n_experts, top_k, norm_topk_prob):
    """One token tile: logits = x @ W^T (f32 acc), softmax stats, top-k on the
    logits, weights from the k winners only, packed lane-dense store."""
    tm = out_ref.shape[0]
    out_lanes = out_ref.shape[1]
    neg_inf = jnp.float32(-1e30)

    x = x_ref[...]                                   # (TM, H) native dtype
    wt = wt_ref[...]                                 # (H, E_pad)

    # F.linear semantics: logits[t, e] = sum_h x[t, h] * w[e, h]
    logits = jnp.dot(x, wt, preferred_element_type=jnp.float32)   # (TM, E_pad) f32

    expert_ids = lax.broadcasted_iota(jnp.int32, logits.shape, 1)  # (TM, E_pad)
    if logits.shape[1] != n_experts:
        # padded experts must never win the max / be selected
        logits = jnp.where(expert_ids < n_experts, logits, neg_inf)

    # softmax statistics (only full-width work: 1 max, 1 exp, 1 sum)
    m = jnp.max(logits, axis=-1, keepdims=True)                    # (TM, 1)
    denom = jnp.sum(jnp.exp(logits - m), axis=-1, keepdims=True)   # (TM, 1); pad -> 0

    # iterative top-k on the LOGITS (softmax is monotonic); ties broken toward
    # the lower index (matches torch.topk). k is small & static -> unrolled.
    big_idx = jnp.int32(2 ** 30)
    s = logits
    top_logit_l = []
    top_idx_l = []
    for kk in range(top_k):
        if kk > 0:
            # knock out the previous winner (folded here so the last iteration
            # emits no dead select)
            s = jnp.where(expert_ids == top_idx_l[-1], neg_inf, s)
        mx = jnp.max(s, axis=-1, keepdims=True)                     # (TM, 1)
        sel = jnp.min(jnp.where(s == mx, expert_ids, big_idx),
                      axis=-1, keepdims=True)                       # (TM, 1)
        top_logit_l.append(mx)
        top_idx_l.append(sel)

    top_logits = jnp.concatenate(top_logit_l, axis=-1)              # (TM, k) f32
    topk_idx = jnp.concatenate(top_idx_l, axis=-1)                  # (TM, k) i32

    # routing weights from the winners only (narrow (TM,k) work, exact division)
    topk_weight = jnp.exp(top_logits - m) / denom                   # (TM, k) f32

    if top_k > 1 and norm_topk_prob:
        d = jnp.sum(topk_weight, axis=-1, keepdims=True) + jnp.float32(1e-20)
        topk_weight = topk_weight / d

    # Pack into one lane-dense f32 slab: [weights | indices-as-values | zeros].
    parts = [topk_weight.astype(jnp.float32), topk_idx.astype(jnp.float32)]
    pad = out_lanes - 2 * top_k
    if pad > 0:
        parts.append(jnp.zeros((tm, pad), jnp.float32))
    out_ref[...] = jnp.concatenate(parts, axis=-1)


def _plan_tiles(tokens, h, e_pad, out_lanes, x_itemsize, w_itemsize):
    """Pick a token tile TM and a VMEM limit from the chip's VMEM capacity
    (v5e/v6e: 128 MiB, v7x: 64 MiB). TM is capped at 1024 and sized so the
    grid has >= ~4 steps; rounded to the dtype's sublane packing."""
    try:
        vmem_cap = int(pltpu.get_tpu_info().vmem_capacity_bytes)
    except Exception:
        vmem_cap = 64 << 20                          # conservative (v7x)

    budget = int(vmem_cap * 0.4)                     # headroom for compiler temps
    resident_w = h * e_pad * w_itemsize              # single-buffered gate weight
    per_row = (2 * h * x_itemsize                    # double-buffered x tile row
               + 6 * e_pad * 4                       # f32 logits / exp / top-k temps
               + 2 * out_lanes * 4)                  # double-buffered packed out row

    sub = max(8, 32 // max(x_itemsize, 1))           # sublane packing: f32 8, bf16 16

    tm = (budget - resident_w) // max(per_row, 1)
    tm = min(int(tm), 1024)                          # >1024 buys <2%, doubles VMEM
    # keep the grid >= ~4 steps (v7x megacore balance, pipeline fill/drain)
    tm = min(tm, _round_up(pl.cdiv(tokens, 4), sub))
    tm -= tm % sub
    tm = max(tm, sub)

    bytes_needed = resident_w + tm * per_row
    vmem_limit = int(min(max(bytes_needed * 2, 32 << 20), int(vmem_cap * 0.7)))
    return tm, vmem_limit


def prepare_gate_weight(weight, activation_dtype):
    """Pre-transpose (+cast, +expert-axis pad to 128 lanes) the gate weight.
    Call ONCE at parameter-load time and pass the result to moe_gate(...,
    weight_t=...) to avoid a per-call transpose / HBM round trip.

    NOTE: casting the weight to a bf16 activation dtype gives bf16 gating
    logits (f32-accumulated on the MXU). Near-tie routing decisions may differ
    from the f32 PyTorch reference; pass activation_dtype=jnp.float32 if exact
    routing parity is required."""
    weight = jnp.asarray(weight)
    n_experts = weight.shape[0]
    e_pad = _round_up(n_experts, 128)
    w_t = weight.T.astype(activation_dtype)          # (H, E)
    if e_pad != n_experts:
        w_t = jnp.pad(w_t, ((0, 0), (0, e_pad - n_experts)))
    return w_t


def moe_gate(hidden_states, weight, *, top_k, norm_topk_prob=True, weight_t=None):
    """Pallas MoE gate forward.

    Args:
      hidden_states: [bsz, seq_len, dim] (f32 or bf16)
      weight:        [n_routed_experts, dim] gating matrix
      weight_t:      optional pre-prepared weight from prepare_gate_weight()
    Returns:
      (topk_idx [bsz*seq_len, top_k] int32,
       topk_weight [bsz*seq_len, top_k] float32,
       aux_loss (scalar 0.0 — inference / alpha==0 path))
    """
    bsz, seq_len, h = hidden_states.shape
    n_experts = weight.shape[0]
    tokens = bsz * seq_len

    x = hidden_states.reshape(tokens, h)             # native dtype, no up-cast
    if weight_t is None:
        weight_t = prepare_gate_weight(weight, x.dtype)
    e_pad = weight_t.shape[1]
    assert e_pad % 128 == 0 and e_pad >= n_experts

    out_lanes = max(128, _round_up(2 * top_k, 128))
    tm, vmem_limit = _plan_tiles(tokens, h, e_pad, out_lanes,
                                 x.dtype.itemsize, weight_t.dtype.itemsize)
    t_pad = _round_up(tokens, tm)
    if t_pad != tokens:
        x = jnp.pad(x, ((0, t_pad - tokens), (0, 0)))

    kernel = functools.partial(
        _moe_gate_kernel, n_experts=n_experts, top_k=top_k,
        norm_topk_prob=norm_topk_prob)

    def _call(weight_pipeline_mode):
        w_spec_kwargs = {}
        if weight_pipeline_mode is not None:
            w_spec_kwargs["pipeline_mode"] = weight_pipeline_mode
        return pl.pallas_call(
            kernel,
            out_shape=jax.ShapeDtypeStruct((t_pad, out_lanes), jnp.float32),
            grid_spec=pltpu.PrefetchScalarGridSpec(
                num_scalar_prefetch=0,
                grid=(t_pad // tm,),
                in_specs=[
                    # streamed x tile (double-buffered by the pipeline)
                    pl.BlockSpec((tm, h), lambda i: (i, 0)),
                    # resident gate weight: constant index_map
                    pl.BlockSpec((h, e_pad), lambda i: (0, 0), **w_spec_kwargs),
                ],
                out_specs=pl.BlockSpec((tm, out_lanes), lambda i: (i, 0)),
            ),
            compiler_params=pltpu.CompilerParams(
                dimension_semantics=("parallel",),
                vmem_limit_bytes=vmem_limit),
        )(x, weight_t)

    try:
        # single-buffer the constant weight block (frees h*e_pad*itemsize VMEM)
        packed = _call(pl.Buffered(1))
    except Exception:
        # fallback for Pallas versions that reject single-buffering here
        packed = _call(None)

    topk_weight = packed[:tokens, :top_k]
    topk_idx = packed[:tokens, top_k:2 * top_k].astype(jnp.int32)

    # TODO(synk): training-time auxiliary load-balancing loss (seq_aux / global
    # variants) not implemented; eval / alpha==0 path returns 0 like the module.
    aux_loss = jnp.float32(0.0)
    return topk_idx, topk_weight, aux_loss


def init_gate_weight(key, n_routed_experts, gating_dim):
    """kaiming_uniform_(a=sqrt(5)) over shape (n_experts, dim):
    bound = gain * sqrt(3 / fan_in), gain = sqrt(2/(1+a^2)) = sqrt(1/3)
    => bound = 1 / sqrt(fan_in)."""
    bound = 1.0 / math.sqrt(gating_dim)
    return jax.random.uniform(
        key, (n_routed_experts, gating_dim),
        minval=-bound, maxval=bound, dtype=jnp.float32)


if __name__ == "__main__":
    # LMConfig-like settings, small shapes
    bsz, seq_len, dim = 2, 8, 32
    n_routed_experts = 8
    num_experts_per_tok = 2
    norm_topk_prob = True

    key = jax.random.PRNGKey(0)
    k_x, k_w = jax.random.split(key)
    hidden_states = jax.random.normal(k_x, (bsz, seq_len, dim), dtype=jnp.float32)
    gate_w = init_gate_weight(k_w, n_routed_experts, dim)

    # Hoisted once (parameter-load time), reused across calls.
    gate_w_t_f32 = prepare_gate_weight(gate_w, jnp.float32)

    topk_idx, topk_weight, aux_loss = moe_gate(
        hidden_states, gate_w, top_k=num_experts_per_tok,
        norm_topk_prob=norm_topk_prob, weight_t=gate_w_t_f32)
    jax.block_until_ready((topk_idx, topk_weight, aux_loss))

    # f32 check against a pure-JAX reference.
    x2 = hidden_states.reshape(-1, dim)
    logits_ref = x2 @ gate_w.T
    scores_ref = jax.nn.softmax(logits_ref, axis=-1)
    vals_ref, idx_ref = lax.top_k(scores_ref, num_experts_per_tok)
    vals_ref = vals_ref / (vals_ref.sum(-1, keepdims=True) + 1e-20)
    assert topk_idx.shape == (bsz * seq_len, num_experts_per_tok)
    assert topk_idx.dtype == jnp.int32
    assert topk_weight.dtype == jnp.float32
    assert bool(jnp.all(jnp.sort(topk_idx, axis=-1) == jnp.sort(idx_ref, axis=-1)))
    assert bool(jnp.allclose(jnp.sort(topk_weight, axis=-1),
                             jnp.sort(vals_ref, axis=-1), atol=1e-4))

    # bf16 streaming path: exercise the native-dtype route (robust checks only;
    # bf16 logits may flip near-tie selections vs the f32 reference).
    hs_bf16 = hidden_states.astype(jnp.bfloat16)
    gate_w_t_bf16 = prepare_gate_weight(gate_w, jnp.bfloat16)
    idx_bf, wgt_bf, _ = moe_gate(
        hs_bf16, gate_w, top_k=num_experts_per_tok,
        norm_topk_prob=norm_topk_prob, weight_t=gate_w_t_bf16)
    jax.block_until_ready((idx_bf, wgt_bf))
    assert bool(jnp.all((idx_bf >= 0) & (idx_bf < n_routed_experts)))
    assert bool(jnp.allclose(wgt_bf.sum(-1), 1.0, atol=1e-3))

    print("KERNEL_OK")
</pallas_src>

<mosaic_0001>
module attributes {stable_mosaic.version = 11 : i64} {
  func.func @_moe_gate_kernel(%arg0: i32, %arg1: memref<8x32xf32, #tpu.memory_space<vmem>>, %arg2: memref<32x128xf32, #tpu.memory_space<vmem>>, %arg3: memref<8x128xf32, #tpu.memory_space<vmem>>) attributes {dimension_semantics = [#tpu.dimension_semantics<parallel>], iteration_bounds = array<i64: 2>, scalar_prefetch = 0 : i64, scratch_operands = 0 : i64, tpu.core_type = #tpu.core_type<tc>, window_params = [{transform_indices = @transform_0, window_bounds = array<i64: 8, 32>}, {pipeline_mode = #tpu.pipeline_mode<synchronous>, transform_indices = @transform_1, window_bounds = array<i64: 32, 128>}, {transform_indices = @transform_2, window_bounds = array<i64: 8, 128>}]} {
    %c0 = arith.constant 0 : index
    %c0_0 = arith.constant 0 : index
    %0 = vector.load %arg1[%c0, %c0_0] : memref<8x32xf32, #tpu.memory_space<vmem>>, vector<8x32xf32>
    %c0_1 = arith.constant 0 : index
    %c0_2 = arith.constant 0 : index
    %1 = vector.load %arg2[%c0_1, %c0_2] : memref<32x128xf32, #tpu.memory_space<vmem>>, vector<32x128xf32>
    %cst = arith.constant dense<0.000000e+00> : vector<8x128xf32>
    %2 = tpu.matmul %0, %1, %cst {dimension_numbers = #tpu.dot_dimension_numbers<[1], [0], [0], [1], [0, 0, 1, 1], [], []>} : vector<8x32xf32>, vector<32x128xf32>, vector<8x128xf32> -> vector<8x128xf32>
    %3 = tpu.iota {dimensions = array<i32: 1>} : vector<8x128xi32>
    %c8_i32 = arith.constant 8 : i32
    %4 = vector.broadcast %c8_i32 : i32 to vector<8x128xi32>
    %5 = arith.cmpi slt, %3, %4 : vector<8x128xi32>
    %cst_3 = arith.constant -1.000000e+30 : f32
    %6 = vector.broadcast %cst_3 : f32 to vector<8x128xf32>
    %7 = arith.select %5, %2, %6 : vector<8x128xi1>, vector<8x128xf32>
    %cst_4 = arith.constant dense<0xFF800000> : vector<8xf32>
    %8 = vector.multi_reduction <maximumf>, %7, %cst_4 [1] : vector<8x128xf32> to vector<8xf32>
    %9 = vector.shape_cast %8 : vector<8xf32> to vector<8x1xf32>
    %10 = vector.broadcast %9 : vector<8x1xf32> to vector<8x128xf32>
    %11 = arith.subf %7, %10 : vector<8x128xf32>
    %12 = math.exp %11 : vector<8x128xf32>
    %cst_5 = arith.constant dense<0.000000e+00> : vector<8xf32>
    %13 = vector.multi_reduction <add>, %12, %cst_5 [1] : vector<8x128xf32> to vector<8xf32>
    %14 = vector.shape_cast %13 : vector<8xf32> to vector<8x1xf32>
    %cst_6 = arith.constant dense<0xFF800000> : vector<8xf32>
    %15 = vector.multi_reduction <maximumf>, %7, %cst_6 [1] : vector<8x128xf32> to vector<8xf32>
    %16 = vector.shape_cast %15 : vector<8xf32> to vector<8x1xf32>
    %17 = vector.broadcast %16 : vector<8x1xf32> to vector<8x128xf32>
    %18 = arith.cmpf oeq, %7, %17 : vector<8x128xf32>
    %c1073741824_i32 = arith.constant 1073741824 : i32
    %19 = vector.broadcast %c1073741824_i32 : i32 to vector<8x128xi32>
    %20 = arith.select %18, %3, %19 : vector<8x128xi1>, vector<8x128xi32>
    %cst_7 = arith.constant dense<2147483647> : vector<8xi32>
    %21 = vector.multi_reduction <minsi>, %20, %cst_7 [1] : vector<8x128xi32> to vector<8xi32>
    %22 = vector.shape_cast %21 : vector<8xi32> to vector<8x1xi32>
    %23 = vector.broadcast %22 : vector<8x1xi32> to vector<8x128xi32>
    %24 = arith.cmpi eq, %3, %23 : vector<8x128xi32>
    %cst_8 = arith.constant -1.000000e+30 : f32
    %25 = vector.broadcast %cst_8 : f32 to vector<8x128xf32>
    %26 = arith.select %24, %25, %7 : vector<8x128xi1>, vector<8x128xf32>
    %cst_9 = arith.constant dense<0xFF800000> : vector<8xf32>
    %27 = vector.multi_reduction <maximumf>, %26, %cst_9 [1] : vector<8x128xf32> to vector<8xf32>
    %28 = vector.shape_cast %27 : vector<8xf32> to vector<8x1xf32>
    %29 = vector.broadcast %28 : vector<8x1xf32> to vector<8x128xf32>
    %30 = arith.cmpf oeq, %26, %29 : vector<8x128xf32>
    %c1073741824_i32_10 = arith.constant 1073741824 : i32
    %31 = vector.broadcast %c1073741824_i32_10 : i32 to vector<8x128xi32>
    %32 = arith.select %30, %3, %31 : vector<8x128xi1>, vector<8x128xi32>
    %cst_11 = arith.constant dense<2147483647> : vector<8xi32>
    %33 = vector.multi_reduction <minsi>, %32, %cst_11 [1] : vector<8x128xi32> to vector<8xi32>
    %34 = vector.shape_cast %33 : vector<8xi32> to vector<8x1xi32>
    %35 = tpu.concatenate %16, %28 in 1 : vector<8x1xf32>, vector<8x1xf32> -> vector<8x2xf32>
    %36 = tpu.concatenate %22, %34 in 1 : vector<8x1xi32>, vector<8x1xi32> -> vector<8x2xi32>
    %37 = vector.broadcast %9 : vector<8x1xf32> to vector<8x2xf32>
    %38 = arith.subf %35, %37 : vector<8x2xf32>
    %39 = math.exp %38 : vector<8x2xf32>
    %40 = vector.broadcast %14 : vector<8x1xf32> to vector<8x2xf32>
    %41 = arith.divf %39, %40 : vector<8x2xf32>
    %cst_12 = arith.constant dense<0.000000e+00> : vector<8xf32>
    %42 = vector.multi_reduction <add>, %41, %cst_12 [1] : vector<8x2xf32> to vector<8xf32>
    %43 = vector.shape_cast %42 : vector<8xf32> to vector<8x1xf32>
    %cst_13 = arith.constant 9.99999968E-21 : f32
    %44 = vector.broadcast %cst_13 : f32 to vector<8x1xf32>
    %45 = arith.addf %43, %44 : vector<8x1xf32>
    %46 = vector.broadcast %45 : vector<8x1xf32> to vector<8x2xf32>
    %47 = arith.divf %41, %46 : vector<8x2xf32>
    %48 = arith.sitofp %36 : vector<8x2xi32> to vector<8x2xf32>
    %cst_14 = arith.constant 0.000000e+00 : f32
    %49 = vector.broadcast %cst_14 : f32 to vector<8x124xf32>
    %50 = tpu.concatenate %47, %48, %49 in 1 : vector<8x2xf32>, vector<8x2xf32>, vector<8x124xf32> -> vector<8x128xf32>
    %c0_15 = arith.constant 0 : index
    %c0_16 = arith.constant 0 : index
    %51 = vector.load %arg3[%c0_15, %c0_16] : memref<8x128xf32, #tpu.memory_space<vmem>>, vector<8x128xf32>
    tpu.vector_store %arg3[%c0_15, %c0_16], %50 {strides = array<i32>} : memref<8x128xf32, #tpu.memory_space<vmem>>, vector<8x128xf32>,
    return
  }
  func.func @transform_0(%arg0: i32) -> (i32, i32) {
    %c0_i32 = arith.constant 0 : i32
    %c0_i32_0 = arith.constant 0 : i32
    return %arg0, %c0_i32 : i32, i32
  }
  func.func @transform_1(%arg0: i32) -> (i32, i32) {
    %c0_i32 = arith.constant 0 : i32
    %c0_i32_0 = arith.constant 0 : i32
    %c0_i32_1 = arith.constant 0 : i32
    return %c0_i32, %c0_i32_0 : i32, i32
  }
  func.func @transform_2(%arg0: i32) -> (i32, i32) {
    %c0_i32 = arith.constant 0 : i32
    %c0_i32_0 = arith.constant 0 : i32
    return %arg0, %c0_i32 : i32, i32
  }
}

module attributes {stable_mosaic.version = 11 : i64} {
  func.func @_moe_gate_kernel(%arg0: i32, %arg1: memref<8x32xf32, #tpu.memory_space<vmem>>, %arg2: memref<32x128xf32, #tpu.memory_space<vmem>>, %arg3: memref<8x128xf32, #tpu.memory_space<vmem>>) attributes {dimension_semantics = [#tpu.dimension_semantics<parallel>], iteration_bounds = array<i64: 2>, scalar_prefetch = 0 : i64, scratch_operands = 0 : i64, tpu.core_type = #tpu.core_type<tc>, window_params = [{transform_indices = @transform_0, window_bounds = array<i64: 8, 32>}, {pipeline_mode = #tpu.pipeline_mode<synchronous>, transform_indices = @transform_1, window_bounds = array<i64: 32, 128>}, {transform_indices = @transform_2, window_bounds = array<i64: 8, 128>}]} {
    %c0 = arith.constant 0 : index
    %c0_0 = arith.constant 0 : index
    %0 = vector.load %arg1[%c0, %c0_0] : memref<8x32xf32, #tpu.memory_space<vmem>>, vector<8x32xf32>
    %c0_1 = arith.constant 0 : index
    %c0_2 = arith.constant 0 : index
    %1 = vector.load %arg2[%c0_1, %c0_2] : memref<32x128xf32, #tpu.memory_space<vmem>>, vector<32x128xf32>
    %cst = arith.constant dense<0.000000e+00> : vector<8x128xf32>
    %2 = tpu.matmul %0, %1, %cst {dimension_numbers = #tpu.dot_dimension_numbers<[1], [0], [0], [1], [0, 0, 1, 1], [], []>} : vector<8x32xf32>, vector<32x128xf32>, vector<8x128xf32> -> vector<8x128xf32>
    %3 = tpu.iota {dimensions = array<i32: 1>} : vector<8x128xi32>
    %c8_i32 = arith.constant 8 : i32
    %4 = vector.broadcast %c8_i32 : i32 to vector<8x128xi32>
    %5 = arith.cmpi slt, %3, %4 : vector<8x128xi32>
    %cst_3 = arith.constant -1.000000e+30 : f32
    %6 = vector.broadcast %cst_3 : f32 to vector<8x128xf32>
    %7 = arith.select %5, %2, %6 : vector<8x128xi1>, vector<8x128xf32>
    %cst_4 = arith.constant dense<0xFF800000> : vector<8xf32>
    %8 = vector.multi_reduction <maximumf>, %7, %cst_4 [1] : vector<8x128xf32> to vector<8xf32>
    %9 = vector.shape_cast %8 : vector<8xf32> to vector<8x1xf32>
    %10 = vector.broadcast %9 : vector<8x1xf32> to vector<8x128xf32>
    %11 = arith.subf %7, %10 : vector<8x128xf32>
    %12 = math.exp %11 : vector<8x128xf32>
    %cst_5 = arith.constant dense<0.000000e+00> : vector<8xf32>
    %13 = vector.multi_reduction <add>, %12, %cst_5 [1] : vector<8x128xf32> to vector<8xf32>
    %14 = vector.shape_cast %13 : vector<8xf32> to vector<8x1xf32>
    %cst_6 = arith.constant dense<0xFF800000> : vector<8xf32>
    %15 = vector.multi_reduction <maximumf>, %7, %cst_6 [1] : vector<8x128xf32> to vector<8xf32>
    %16 = vector.shape_cast %15 : vector<8xf32> to vector<8x1xf32>
    %17 = vector.broadcast %16 : vector<8x1xf32> to vector<8x128xf32>
    %18 = arith.cmpf oeq, %7, %17 : vector<8x128xf32>
    %c1073741824_i32 = arith.constant 1073741824 : i32
    %19 = vector.broadcast %c1073741824_i32 : i32 to vector<8x128xi32>
    %20 = arith.select %18, %3, %19 : vector<8x128xi1>, vector<8x128xi32>
    %cst_7 = arith.constant dense<2147483647> : vector<8xi32>
    %21 = vector.multi_reduction <minsi>, %20, %cst_7 [1] : vector<8x128xi32> to vector<8xi32>
    %22 = vector.shape_cast %21 : vector<8xi32> to vector<8x1xi32>
    %23 = vector.broadcast %22 : vector<8x1xi32> to vector<8x128xi32>
    %24 = arith.cmpi eq, %3, %23 : vector<8x128xi32>
    %cst_8 = arith.constant -1.000000e+30 : f32
    %25 = vector.broadcast %cst_8 : f32 to vector<8x128xf32>
    %26 = arith.select %24, %25, %7 : vector<8x128xi1>, vector<8x128xf32>
    %cst_9 = arith.constant dense<0xFF800000> : vector<8xf32>
    %27 = vector.multi_reduction <maximumf>, %26, %cst_9 [1] : vector<8x128xf32> to vector<8xf32>
    %28 = vector.shape_cast %27 : vector<8xf32> to vector<8x1xf32>
    %29 = vector.broadcast %28 : vector<8x1xf32> to vector<8x128xf32>
    %30 = arith.cmpf oeq, %26, %29 : vector<8x128xf32>
    %c1073741824_i32_10 = arith.constant 1073741824 : i32
    %31 = vector.broadcast %c1073741824_i32_10 : i32 to vector<8x128xi32>
    %32 = arith.select %30, %3, %31 : vector<8x128xi1>, vector<8x128xi32>
    %cst_11 = arith.constant dense<2147483647> : vector<8xi32>
    %33 = vector.multi_reduction <minsi>, %32, %cst_11 [1] : vector<8x128xi32> to vector<8xi32>
    %34 = vector.shape_cast %33 : vector<8xi32> to vector<8x1xi32>
    %35 = tpu.concatenate %16, %28 in 1 : vector<8x1xf32>, vector<8x1xf32> -> vector<8x2xf32>
    %36 = tpu.concatenate %22, %34 in 1 : vector<8x1xi32>, vector<8x1xi32> -> vector<8x2xi32>
    %37 = vector.broadcast %9 : vector<8x1xf32> to vector<8x2xf32>
    %38 = arith.subf %35, %37 : vector<8x2xf32>
    %39 = math.exp %38 : vector<8x2xf32>
    %40 = vector.broadcast %14 : vector<8x1xf32> to vector<8x2xf32>
    %41 = arith.divf %39, %40 : vector<8x2xf32>
    %cst_12 = arith.constant dense<0.000000e+00> : vector<8xf32>
    %42 = vector.multi_reduction <add>, %41, %cst_12 [1] : vector<8x2xf32> to vector<8xf32>
    %43 = vector.shape_cast %42 : vector<8xf32> to vector<8x1xf32>
    %cst_13 = arith.constant 9.99999968E-21 : f32
    %44 = vector.broadcast %cst_13 : f32 to vector<8x1xf32>
    %45 = arith.addf %43, %44 : vector<8x1xf32>
    %46 = vector.broadcast %45 : vector<8x1xf32> to vector<8x2xf32>
    %47 = arith.divf %41, %46 : vector<8x2xf32>
    %48 = arith.sitofp %36 : vector<8x2xi32> to vector<8x2xf32>
    %cst_14 = arith.constant 0.000000e+00 : f32
    %49 = vector.broadcast %cst_14 : f32 to vector<8x124xf32>
    %50 = tpu.concatenate %47, %48, %49 in 1 : vector<8x2xf32>, vector<8x2xf32>, vector<8x124xf32> -> vector<8x128xf32>
    %c0_15 = arith.constant 0 : index
    %c0_16 = arith.constant 0 : index
    %51 = vector.load %arg3[%c0_15, %c0_16] : memref<8x128xf32, #tpu.memory_space<vmem>>, vector<8x128xf32>
    tpu.vector_store %arg3[%c0_15, %c0_16], %50 {strides = array<i32>} : memref<8x128xf32, #tpu.memory_space<vmem>>, vector<8x128xf32>,
    return
  }
  func.func @transform_0(%arg0: i32) -> (i32, i32) {
    %c0_i32 = arith.constant 0 : i32
    %c0_i32_0 = arith.constant 0 : i32
    return %arg0, %c0_i32 : i32, i32
  }
  func.func @transform_1(%arg0: i32) -> (i32, i32) {
    %c0_i32 = arith.constant 0 : i32
    %c0_i32_0 = arith.constant 0 : i32
    %c0_i32_1 = arith.constant 0 : i32
    return %c0_i32, %c0_i32_0 : i32, i32
  }
  func.func @transform_2(%arg0: i32) -> (i32, i32) {
    %c0_i32 = arith.constant 0 : i32
    %c0_i32_0 = arith.constant 0 : i32
    return %arg0, %c0_i32 : i32, i32
  }
}

</mosaic_0001>

<bundles_post_ra>
// kernel: tpu_custom_call.1
= control target key start
LH: loop header
LB: loop body
LE: loop exit
PB: predicated region body
PF: predicated region fallthrough
CT: control target
= control target key end

     0   :  { %7 = vsyncpa [#allocation3], 0  ;;  %s884_s0 = inlined_call_operand.hbm [shape: f32[16,32], index: 0, kind: input, shape index: {}]   ;;  %s885_s1 = inlined_call_operand.hbm [shape: f32[32,128], index: 1, kind: input, shape index: {}]   ;;  %s886_s2 = inlined_call_operand.hbm [shape: f32[16,128], index: 2, kind: output, shape index: {}]  }
   0x1   :  { %9 = vsyncpa [#allocation3 + $0x1], 0 }
   0x2   :  { %10 = vsyncpa [#allocation6], 0 }
   0x3   :  { %11 = vsyncpa [#allocation4], 0 }
   0x4   :  { %13 = vsyncpa [#allocation4 + $0x1], 0  ;;  %s680_s9 = smov 0   ;;  %s682_s10 = smov 0  }
   0x5   :  { %s684_s11 = smov 0   ;;  %s686_s12 = smov 0  }
   0x6 LB: > { %s701_s13 = sadd.s32 4294967295, %s654_s12   ;;  %s418_s14 = sadd.s32 4294967294, %s654_s12   ;;  %s654_s12 = sphi %s686_s12, %s906_s12   ;;  %s650_s11 = sphi %s684_s11, %s905_s11   ;;  %s646_s10 = sphi %s682_s10, %s904_s10   ;;  %s642_s9 = sphi %s680_s9, %s903_s9  }
   0x7   : > { %p39_p0 = scmp.ne.s32.totalorder %s646_s10, %s642_s9  ;;  %p887_p1 = scmp.eq.s32.totalorder %s701_s13, 0 }
   0x8   : > { %p90_p3 = scmp.eq.s32.totalorder %s418_s14, 1  ;;  %p419_p5 = scmp.ge.s32.totalorder %s654_s12, 1 }
   0x9   : > { %p710_p4 = por %p887_p1, %p39_p0  ;;  %p97_p7 = scmp.lt.s32.totalorder %s654_s12, 3 }
   0xa   : > { %p715_p6 = por %p90_p3, %p39_p0  ;;  %s656_s18 = smov [#allocation5]  }
   0xb   : > { %s890_s15 = scalar_select %p710_p4, 1, 0 }
   0xc   : > { %s891_s16 = scalar_select %p715_p6, 1, 0 }
   0xd   : > { %p720_p8 = pnand %p419_p5, %p97_p7  ;;  %s109_s19 = sshll.u32 %s656_s18, 4  ;;  %s724_s19 = int_to_ptr.vmem [resolvable:$true] %s109_s19 }
   0xe   : > { %s736_s21 = sadd.s32 1, %s654_s12   ;;  %s26_s22 = sadd.s32 1, %s650_s11 }
   0xf   : > { %s892_s17 = scalar_select %p720_p8, 1, 0 }
  0x10   : > { %p463_p9 = pneg %p720_p8  ;;  %s23_s23 = ssub.s32 %s654_s12, %s736_s21 }
  0x11   : > { %s526_s26 = scalar_lea.hbm %s885_s1, 512 }
  0x12   : > { %p731_p11 = pnand %p463_p9, %p887_p1  ;;  %p527_p12 = scmp.ne.s32.totalorder %s885_s1, %s526_s26 }
  0x13   : > { %p533_p5 = scmp.lt.u32.totalorder %s526_s26, %s885_s1 }
  0x14   : > { %p528_p13 = pneg %p731_p11 }
  0x16   : > { %p529_p0 = pnand %p528_p13, %p527_p12 }
  0x18   : > { %p530_p3 = pneg %p529_p0 }
  0x1a   : > { %p535_p7 = pnand %p533_p5, %p530_p3 }
  0x1c   : > { %538 = shalt.err (!%p535_p7)
}
  0x1d   : > { %s539_s3 = scalar_lea.vmem %s724_s19, 512  ;;  %p547_p2 = scmp.lt.s32.totalorder %s724_s19, %s724_s19 }
  0x1e   : > { %p540_p9 = scmp.ne.s32.totalorder %s724_s19, %s539_s3  ;;  %p548_p6 = scmp.lt.s32.totalorder %s539_s3, %s539_s3 }
  0x20   : > { %p542_p10 = pnand %p540_p9, %p528_p13  ;;  %p549_p4 = por %p548_p6, %p547_p2 }
  0x22   : > { %p543_p1 = pneg %p542_p10 }
  0x24   : > { %p550_p8 = pnand %p549_p4, %p543_p1 }
  0x26   : > { %553 = shalt.err (!%p550_p8)
}
  0x27   : > { %s657_s4 = smov 128   ;;  %s658_s5 = smov 8  }
  0x28   : > { %466 = dma.hbm_to_vmem [thread:$0]  (!%p731_p11), %s885_s1, 512, %s724_s19, [#allocation6], %s657_s4, %s657_s4, %s658_s5  }
  0x29   : > { %p24_p2 = scmp.eq.s32.totalorder %s23_s23, 0  ;;  %p33_p1 = scmp.ne.s32.totalorder %s650_s11, %s646_s10 }
  0x2a   : > { %p34_p4 = scmp.eq.s32.totalorder %s654_s12, 0  ;;  %p476_p6 = scmp.lt.s32.totalorder %s654_s12, 2 }
  0x2b   : > { %s767_s8 = scalar_select %p24_p2, %s650_s11, %s26_s22  }
  0x2c   : > { %p35_p8 = por %p34_p4, %p33_p1  ;;  %p894_p10 = scmp.eq.s32.totalorder %s701_s13, 1 }
  0x2d   : > { %s123_s18 = sand.u32 1, %s650_s11   ;;  %s423_s24 = sshll.u32 %s654_s12, 7 }
  0x2e   : > { %p771_p12 = por %p894_p10, %p33_p1  ;;  %s422_s25 = sshll.u32 %s123_s18, 3 }
  0x2f   : > { %s780_s27 = scalar_lea.hbm %s884_s0, %s423_s24  ;;  %s127_s19 = scalar_lea.vmem [#allocation2], %s422_s25 }
  0x30   : > { %s134_s22 = sshll.u32 %s127_s19, 4  ;;  %p782_p11 = pnand %p476_p6, %p35_p8  ;;  %s786_s22 = int_to_ptr.vmem [resolvable:$true] %s134_s22 }
  0x31   : > { %s124_s28 = scalar_lea.sflag [#allocation3], %s123_s18  ;;  %s554_s29 = scalar_lea.hbm %s780_s27, 128 }
  0x32   : > { %p555_p13 = scmp.ne.s32.totalorder %s780_s27, %s554_s29  ;;  %p556_p0 = pneg %p782_p11 }
  0x33   : > { %s559_s4 = scalar_lea.hbm %s884_s0, 256  ;;  %p560_p7 = scmp.lt.u32.totalorder %s780_s27, %s884_s0 }
  0x34   : > { %p557_p3 = pnand %p556_p0, %p555_p13  ;;  %p561_p9 = scmp.lt.u32.totalorder %s559_s4, %s554_s29 }
  0x35   : > { %p563_p1 = scmp.lt.u32.totalorder %s554_s29, %s780_s27 }
  0x36   : > { %p558_p5 = pneg %p557_p3  ;;  %p562_p2 = por %p561_p9, %p560_p7 }
  0x38   : > { %p564_p4 = por %p563_p1, %p562_p2 }
  0x3a   : > { %p565_p6 = pnand %p564_p4, %p558_p5 }
  0x3c   : > { %568 = shalt.err (!%p565_p6)
}
  0x3d   : > { %s569_s7 = scalar_lea.vmem %s786_s22, 128  ;;  %s659_s18 = smov [#allocation2]  }
  0x3e   : > { %p570_p8 = scmp.ne.s32.totalorder %s786_s22, %s569_s7  ;;  %s574_s24 = sshll.u32 %s659_s18, 4  ;;  %s575_s24 = int_to_ptr.vmem [resolvable:$false] %s574_s24 }
  0x3f   : > { %s576_s25 = scalar_lea.vmem %s575_s24, 256  ;;  %p577_p3 = scmp.lt.s32.totalorder %s786_s22, %s575_s24 }
  0x40   : > { %p572_p10 = pnand %p570_p8, %p556_p0  ;;  %p578_p7 = scmp.lt.s32.totalorder %s576_s25, %s569_s7 }
  0x42   : > { %p573_p13 = pneg %p572_p10  ;;  %p579_p9 = por %p578_p7, %p577_p3 }
  0x44   : > { %p580_p2 = pnand %p579_p9, %p573_p13 }
  0x46   : > { %583 = shalt.err (!%p580_p2)
}
  0x47   : > { %470 = dma.hbm_to_vmem [thread:$0]  (!%p782_p11), %s780_s27, 128, %s786_s22, %s124_s28  }
  0x48   : > { %p897_p5 = scmp.ne.s32.totalorder %s892_s17, 0 }
  0x49   : > { %s816_s20 = sand.u32 (!%p897_p5), 1, %s646_s10   ;;  %p898_p0 = scmp.ne.s32.totalorder (!%p897_p5), %s890_s15, 0 }
  0x4a   : > { %143 = sbr.rel (%p897_p5) target bundleno = 1320 (0x528), region = 28  ;;  %s425_s26 = sshll.u32 (!%p897_p5), %s816_s20, 3 }
  0x4b   : > { %s146_s19 = scalar_lea.sflag (!%p897_p5), [#allocation3], %s816_s20  ;;  %s149_s29 = scalar_lea.vmem (!%p897_p5), [#allocation2], %s425_s26 }
  0x51   : > { %629 = dma.done.wait (%p898_p0), %s146_s19, 128  }
  0x52   : > { %631 = vsyncadd (%p898_p0), %s146_s19, 4294967168  ;;  %p899_p11 = scmp.eq.s32.totalorder %s701_s13, 0 }
  0x54   : > { %633 = dma.done.wait (%p899_p11), [#allocation6], 512   ;;  %p900_p1 = pmov %p899_p11 }
  0x55   : > { %v660_v0 = vmov 0.0|0.0   ;;  %vm661_vm0 = vmmov 0   ;;  %v662_v1 = vmov 0.0   ;;  %v175_v2 = vld [vmem:[#allocation5] sm:$0xff]  ;;  %v176_v3 = vld [vmem:[#allocation5 + $0x8] sm:$0xff]  ;;  %v177_v4 = vld [vmem:[#allocation5 + $0x10] sm:$0xff]  ;;  %v253_v9 = vlaneseq }
  0x56   : > { %635 = vsyncadd (%p900_p1), [#allocation6], 4294966784  ;;  %449 = vmatprep.subr.bf16.mxu0 %v660_v0  ;;  %446 = vmatprep.mubr.msk.f32.mxu0 %vm661_vm0, %v662_v1  ;;  %v450_v5 = vpack.c.bf16 %v176_v3, %v175_v2  ;;  %v178_v6 = vld [vmem:[#allocation5 + $0x18] sm:$0xff]  ;;  %vm179_vm1 = vcmask 261120   ;;  %vm300_vm6 = vcmask 7168   ;;  %vm308_vm8 = vcmask 15360  }
  0x57   : > { %v453_v7 = vpack.c.bf16 %v178_v6, %v177_v4  ;;  %v174_v8 = vld [vmem:[%s149_s29] sm:$0xff]  ;;  %v254_v10 = vand.u32 127, %v253_v9  ;;  %s663_s15 = smov 2   ;;  %s430_s17 = sshll.u32 %s701_s13, 7  ;;  %vm321_vm10 = vcmask 31744  }
  0x58   : > { %451 = vmatpush3.bf16.msra.mxu0 %v450_v5  ;;  %s173_s27 = scalar_lea.vmem [#allocation7], %s425_s26  ;;  %s840_s30 = scalar_lea.hbm %s886_s2, %s430_s17 }
  0x59   : > { %452 = vmatprep.subr.bf16.mxu0 %v660_v0  ;;  %vm255_vm2 = vcmp.lt.s32.totalorder %v254_v10, 8  ;;  %s338_s22 = sshll.u32 %s173_s27, 4  ;;  %s325_s13 = scalar_lea.sflag [#allocation4], %s816_s20  ;;  %s842_s22 = int_to_ptr.vmem [resolvable:$true] %s338_s22 }
  0x5a   : > { %s584_s3 = scalar_lea.vmem %s842_s22, 128  ;;  %s664_s4 = smov [#allocation7]  }
  0x5b   : > { %p585_p4 = scmp.ne.s32.totalorder %s842_s22, %s584_s3  ;;  %s588_s5 = sshll.u32 %s664_s4, 4  ;;  %s589_s5 = int_to_ptr.vmem [resolvable:$false] %s588_s5 }
  0x5c   : > { %454 = vmatpush3.bf16.msra.mxu0 %v453_v7  ;;  %s590_s6 = scalar_lea.vmem %s589_s5, 256  ;;  %p591_p10 = scmp.lt.s32.totalorder %s842_s22, %s589_s5 }
  0x5d   : > { %p586_p6 = pnand %p585_p4, %p771_p12  ;;  %p592_p13 = scmp.lt.s32.totalorder %s590_s6, %s584_s3 }
  0x5f   : > { %447 = vmatmul.mubr.msk.f32.vlgmr.msra.gmra.mrb[0].mxu0 %vm179_vm1, %v174_v8  ;;  %p587_p8 = pneg %p586_p6  ;;  %p593_p3 = por %p592_p13, %p591_p10 }
  0x61   : > { %p594_p7 = pnand %p593_p3, %p587_p8 }
 0x132   : > { %v249_v11 = vpop.f32.mrb[0].mxu0 }
 0x133   : > { %v256_v12 = vsel %vm255_vm2, %v249_v11, -1e+30  ;;  %v448_v13 = vpop.f32.mrb[1].mxu0 }
 0x134   : > { %257 = vmax.xlane.f32.xlu0 %v256_v12 }
 0x1c1   : > { %v258_v14 = vpop.xlane.xlu0 %257 }
 0x1c2   : > { %vm264_vm3 = vcmp.eq.f32.partialorder %v256_v12, %v258_v14  ;;  %v259_v22 = vsub.f32 %v256_v12, %v258_v14 }
 0x1c3   : > { %v265_v15 = vsel %vm264_vm3, %v254_v10, 1073741824 }
 0x1c4   : > { %v267_v16 = vshra.s32 %v265_v15, 16  ;;  %v266_v18 = vand.u32 65535, %v265_v15  ;;  %v260_v23 = vmul.f32 1.442695, %v259_v22 }
 0x1c6   : > { %v269_v17 = vcvt.s32.f32 %v267_v16  ;;  %v268_v20 = vcvt.s32.f32 %v266_v18  ;;  %518 = vpow2.f32 %v260_v23 }
 0x1c8   : > { %270 = vmin.xlane.f32.xlu0 %v269_v17 }
 0x1d0   : > { %v519_v30 = vpop.eup %518 }
 0x255   : > { %v271_v19 = vpop.xlane.xlu0 %270 }
 0x256   : > { %vm272_vm4 = vcmp.eq.f32.partialorder %v269_v17, %v271_v19  ;;  %v277_v24 = vcvt.f32.s32 %v271_v19 }
 0x257   : > { %v273_v21 = vsel %vm272_vm4, %v268_v20, inf }
 0x258   : > { %274 = vmin.xlane.f32.xlu1 %v273_v21  ;;  %v278_v26 = vshll.u32 %v277_v24, 16 }
 0x2e5   : > { %v275_v25 = vpop.xlane.xlu1 %274 }
 0x2e6   : > { %v276_v27 = vcvt.f32.s32 %v275_v25 }
 0x2e8   : > { %v279_v28 = vadd.s32 %v278_v26, %v276_v27 }
 0x2ea   : > { %vm280_vm5 = vcmp.eq.s32.totalorder %v254_v10, %v279_v28 }
 0x2eb   : > { %v281_v29 = vsel %vm280_vm5, -1e+30, %v256_v12 }
 0x2ec   : > { %282 = vmax.xlane.f32.xlu1 %v281_v29 }
 0x2f0   : > { %262 = vadd.xlane.f32.xlu1 %v519_v30 }
 0x379   : > { %v283_v31 = vpop.xlane.xlu1 %282 }
 0x37a   : > { %vm284_vm7 = vcmp.eq.f32.partialorder %v281_v29, %v283_v31  ;;  %v301_v32 = vsel %vm300_vm6, %v258_v14, %v283_v31 }
 0x37b   : > { %v285_v33 = vsel %vm284_vm7, %v254_v10, 1073741824  ;;  %v303_v34 = vsub.f32 %v301_v32, %v258_v14 }
 0x37c   : > { %v287_v35 = vshra.s32 %v285_v33, 16  ;;  %v286_v43 = vand.u32 65535, %v285_v33 }
 0x37d   : > { %v304_v36 = vmul.f32 1.442695, %v303_v34  ;;  %v263_v37 = vpop.xlane.xlu1 %262 }
 0x37e   : > { %520 = vrcp.f32 %v263_v37  ;;  %v289_v38 = vcvt.s32.f32 %v287_v35  ;;  %v288_v45 = vcvt.s32.f32 %v286_v43 }
 0x37f   : > { %522 = vpow2.f32 %v304_v36 }
 0x380   : > { %290 = vmin.xlane.f32.xlu0 %v289_v38 }
 0x388   : > { %v521_v39 = vpop.eup %520 }
 0x389   : > { %v523_v40 = vpop.eup %522 }
 0x38a   : > { %v307_v41 = vmul.f32 %v523_v40, %v521_v39 }
 0x38c   : > { %v309_v42 = vsel %vm308_vm8, %v307_v41, 0.0 }
 0x38d   : > { %310 = vadd.xlane.f32.xlu1 %v309_v42 }
 0x40d   : > { %v291_v44 = vpop.xlane.xlu0 %290 }
 0x40e   : > { %vm292_vm9 = vcmp.eq.f32.partialorder %v289_v38, %v291_v44  ;;  %v297_v47 = vcvt.f32.s32 %v291_v44 }
 0x40f   : > { %v293_v46 = vsel %vm292_vm9, %v288_v45, inf }
 0x410   : > { %294 = vmin.xlane.f32.xlu0 %v293_v46  ;;  %v298_v49 = vshll.u32 %v297_v47, 16 }
 0x41a   : > { %v311_v54 = vpop.xlane.xlu1 %310 }
 0x41b   : > { %v312_v55 = vadd.f32 1e-20, %v311_v54 }
 0x41d   : > { %524 = vrcp.f32 %v312_v55 }
 0x427   : > { %v525_v56 = vpop.eup %524 }
 0x428   : > { %v314_v57 = vmul.f32 %v525_v56, %v307_v41 }
 0x49d   : > { %v295_v48 = vpop.xlane.xlu0 %294 }
 0x49e   : > { %v296_v50 = vcvt.f32.s32 %v295_v48 }
 0x4a0   : > { %v299_v51 = vadd.s32 %v298_v49, %v296_v50 }
 0x4a2   : > { %v302_v52 = vsel %vm300_vm6, %v279_v28, %v299_v51 }
 0x4a3   : > { %v315_v53 = vcvt.s32.f32 %v302_v52 }
 0x4a5   : > { %317 = vrot.lane.b32.xlu0 %v315_v53, %s663_s15 }
 0x517   : > { %v318_v58 = vpop.permute.xlu0 %317 }
 0x518   : > { %v320_v59 = vsel %vm308_vm8, %v314_v57, %v318_v58 }
 0x519   : > { %v322_v60 = vsel %vm321_vm10, %v320_v59, 0.0 }
 0x51a   : > { %323 = vst [vmem:[%s173_s27] sm:$0xff] %v322_v60 }
 0x51b   : > { %597 = shalt.err (!%p594_p7)
}
 0x51c   : > { %s598_s7 = scalar_lea.hbm %s840_s30, 128  ;;  %s602_s25 = scalar_lea.hbm %s886_s2, 256 }
 0x51d   : > { %p599_p9 = scmp.ne.s32.totalorder %s840_s30, %s598_s7  ;;  %p603_p0 = scmp.lt.u32.totalorder %s840_s30, %s886_s2 }
 0x51e   : > { %p604_p11 = scmp.lt.u32.totalorder %s602_s25, %s598_s7  ;;  %p606_p4 = scmp.lt.u32.totalorder %s598_s7, %s840_s30 }
 0x51f   : > { %p600_p2 = pnand %p599_p9, %p771_p12 }
 0x520   : > { %p605_p1 = por %p604_p11, %p603_p0 }
 0x521   : > { %p601_p5 = pneg %p600_p2 }
 0x522   : > { %p607_p6 = por %p606_p4, %p605_p1 }
 0x524   : > { %p608_p8 = pnand %p607_p6, %p601_p5 }
 0x526   : > { %611 = shalt.err (!%p608_p8)
}
 0x527   : > { %461 = dma.vmem_to_hbm [thread:$0]  (%p771_p12), %s842_s22, 128, %s840_s30, %s325_s13  }
 0x528 PF: > { %s350_s19 = sand.u32 1, %s642_s9   ;;  %p901_p10 = scmp.ne.s32.totalorder %s891_s16, 0 }
 0x529   : > { %p902_p13 = scmp.ge.s32.totalorder %s654_s12, 2  ;;  %s351_s29 = scalar_lea.sflag [#allocation4], %s350_s19 }
 0x52b   : > { %p472_p3 = pnand %p902_p13, %p901_p10 }
 0x52d   : > { %637 = dma.done.wait (!%p472_p3), %s351_s29, 128  }
 0x52e   : > { %639 = vsyncadd (!%p472_p3), %s351_s29, 4294967168  ;;  %p16_p7 = scmp.ge.s32.totalorder %s736_s21, 4   ;;  %s903_s9 = smov %s646_s10 }
 0x52f   : > { %s904_s10 = smov %s650_s11  ;;  %s905_s11 = smov %s767_s8 }
 0x530   : > { %s906_s12 = smov %s736_s21  ;;  %18 = sbr.rel (!%p16_p7) target bundleno = 6 (0x6), region = 77 }
 0x537   :  { %356 = vsyncpa [#allocation3], 1 }
 0x538   :  { %358 = vsyncpa [#allocation3 + $0x1], 1 }
 0x539   :  { %359 = vsyncpa [#allocation6], 1 }
 0x53a   :  { %360 = vsyncpa [#allocation4], 1 }
 0x53b   :  { %362 = vsyncpa [#allocation4 + $0x1], 1 }

// kernel: tpu_custom_call.1
= control target key start
LH: loop header
LB: loop body
LE: loop exit
PB: predicated region body
PF: predicated region fallthrough
CT: control target
= control target key end

     0   :  { %7 = vsyncpa [#allocation3], 0  ;;  %s884_s0 = inlined_call_operand.hbm [shape: f32[16,32], index: 0, kind: input, shape index: {}]   ;;  %s885_s1 = inlined_call_operand.hbm [shape: f32[32,128], index: 1, kind: input, shape index: {}]   ;;  %s886_s2 = inlined_call_operand.hbm [shape: f32[16,128], index: 2, kind: output, shape index: {}]  }
   0x1   :  { %9 = vsyncpa [#allocation3 + $0x1], 0 }
   0x2   :  { %10 = vsyncpa [#allocation6], 0 }
   0x3   :  { %11 = vsyncpa [#allocation4], 0 }
   0x4   :  { %13 = vsyncpa [#allocation4 + $0x1], 0  ;;  %s680_s9 = smov 0   ;;  %s682_s10 = smov 0  }
   0x5   :  { %s684_s11 = smov 0   ;;  %s686_s12 = smov 0  }
   0x6 LB: > { %s701_s13 = sadd.s32 4294967295, %s654_s12   ;;  %s418_s14 = sadd.s32 4294967294, %s654_s12   ;;  %s654_s12 = sphi %s686_s12, %s906_s12   ;;  %s650_s11 = sphi %s684_s11, %s905_s11   ;;  %s646_s10 = sphi %s682_s10, %s904_s10   ;;  %s642_s9 = sphi %s680_s9, %s903_s9  }
   0x7   : > { %p39_p0 = scmp.ne.s32.totalorder %s646_s10, %s642_s9  ;;  %p887_p1 = scmp.eq.s32.totalorder %s701_s13, 0 }
   0x8   : > { %p90_p3 = scmp.eq.s32.totalorder %s418_s14, 1  ;;  %p419_p5 = scmp.ge.s32.totalorder %s654_s12, 1 }
   0x9   : > { %p710_p4 = por %p887_p1, %p39_p0  ;;  %p97_p7 = scmp.lt.s32.totalorder %s654_s12, 3 }
   0xa   : > { %p715_p6 = por %p90_p3, %p39_p0  ;;  %s656_s18 = smov [#allocation5]  }
   0xb   : > { %s890_s15 = scalar_select %p710_p4, 1, 0 }
   0xc   : > { %s891_s16 = scalar_select %p715_p6, 1, 0 }
   0xd   : > { %p720_p8 = pnand %p419_p5, %p97_p7  ;;  %s109_s19 = sshll.u32 %s656_s18, 4  ;;  %s724_s19 = int_to_ptr.vmem [resolvable:$true] %s109_s19 }
   0xe   : > { %s736_s21 = sadd.s32 1, %s654_s12   ;;  %s26_s22 = sadd.s32 1, %s650_s11 }
   0xf   : > { %s892_s17 = scalar_select %p720_p8, 1, 0 }
  0x10   : > { %p463_p9 = pneg %p720_p8  ;;  %s23_s23 = ssub.s32 %s654_s12, %s736_s21 }
  0x11   : > { %s526_s26 = scalar_lea.hbm %s885_s1, 512 }
  0x12   : > { %p731_p11 = pnand %p463_p9, %p887_p1  ;;  %p527_p12 = scmp.ne.s32.totalorder %s885_s1, %s526_s26 }
  0x13   : > { %p533_p5 = scmp.lt.u32.totalorder %s526_s26, %s885_s1 }
  0x14   : > { %p528_p13 = pneg %p731_p11 }
  0x16   : > { %p529_p0 = pnand %p528_p13, %p527_p12 }
  0x18   : > { %p530_p3 = pneg %p529_p0 }
  0x1a   : > { %p535_p7 = pnand %p533_p5, %p530_p3 }
  0x1c   : > { %538 = shalt.err (!%p535_p7)
}
  0x1d   : > { %s539_s3 = scalar_lea.vmem %s724_s19, 512  ;;  %p547_p2 = scmp.lt.s32.totalorder %s724_s19, %s724_s19 }
  0x1e   : > { %p540_p9 = scmp.ne.s32.totalorder %s724_s19, %s539_s3  ;;  %p548_p6 = scmp.lt.s32.totalorder %s539_s3, %s539_s3 }
  0x20   : > { %p542_p10 = pnand %p540_p9, %p528_p13  ;;  %p549_p4 = por %p548_p6, %p547_p2 }
  0x22   : > { %p543_p1 = pneg %p542_p10 }
  0x24   : > { %p550_p8 = pnand %p549_p4, %p543_p1 }
  0x26   : > { %553 = shalt.err (!%p550_p8)
}
  0x27   : > { %s657_s4 = smov 128   ;;  %s658_s5 = smov 8  }
  0x28   : > { %466 = dma.hbm_to_vmem [thread:$0]  (!%p731_p11), %s885_s1, 512, %s724_s19, [#allocation6], %s657_s4, %s657_s4, %s658_s5  }
  0x29   : > { %p24_p2 = scmp.eq.s32.totalorder %s23_s23, 0  ;;  %p33_p1 = scmp.ne.s32.totalorder %s650_s11, %s646_s10 }
  0x2a   : > { %p34_p4 = scmp.eq.s32.totalorder %s654_s12, 0  ;;  %p476_p6 = scmp.lt.s32.totalorder %s654_s12, 2 }
  0x2b   : > { %s767_s8 = scalar_select %p24_p2, %s650_s11, %s26_s22  }
  0x2c   : > { %p35_p8 = por %p34_p4, %p33_p1  ;;  %p894_p10 = scmp.eq.s32.totalorder %s701_s13, 1 }
  0x2d   : > { %s123_s18 = sand.u32 1, %s650_s11   ;;  %s423_s24 = sshll.u32 %s654_s12, 7 }
  0x2e   : > { %p771_p12 = por %p894_p10, %p33_p1  ;;  %s422_s25 = sshll.u32 %s123_s18, 3 }
  0x2f   : > { %s780_s27 = scalar_lea.hbm %s884_s0, %s423_s24  ;;  %s127_s19 = scalar_lea.vmem [#allocation2], %s422_s25 }
  0x30   : > { %s134_s22 = sshll.u32 %s127_s19, 4  ;;  %p782_p11 = pnand %p476_p6, %p35_p8  ;;  %s786_s22 = int_to_ptr.vmem [resolvable:$true] %s134_s22 }
  0x31   : > { %s124_s28 = scalar_lea.sflag [#allocation3], %s123_s18  ;;  %s554_s29 = scalar_lea.hbm %s780_s27, 128 }
  0x32   : > { %p555_p13 = scmp.ne.s32.totalorder %s780_s27, %s554_s29  ;;  %p556_p0 = pneg %p782_p11 }
  0x33   : > { %s559_s4 = scalar_lea.hbm %s884_s0, 256  ;;  %p560_p7 = scmp.lt.u32.totalorder %s780_s27, %s884_s0 }
  0x34   : > { %p557_p3 = pnand %p556_p0, %p555_p13  ;;  %p561_p9 = scmp.lt.u32.totalorder %s559_s4, %s554_s29 }
  0x35   : > { %p563_p1 = scmp.lt.u32.totalorder %s554_s29, %s780_s27 }
  0x36   : > { %p558_p5 = pneg %p557_p3  ;;  %p562_p2 = por %p561_p9, %p560_p7 }
  0x38   : > { %p564_p4 = por %p563_p1, %p562_p2 }
  0x3a   : > { %p565_p6 = pnand %p564_p4, %p558_p5 }
  0x3c   : > { %568 = shalt.err (!%p565_p6)
}
  0x3d   : > { %s569_s7 = scalar_lea.vmem %s786_s22, 128  ;;  %s659_s18 = smov [#allocation2]  }
  0x3e   : > { %p570_p8 = scmp.ne.s32.totalorder %s786_s22, %s569_s7  ;;  %s574_s24 = sshll.u32 %s659_s18, 4  ;;  %s575_s24 = int_to_ptr.vmem [resolvable:$false] %s574_s24 }
  0x3f   : > { %s576_s25 = scalar_lea.vmem %s575_s24, 256  ;;  %p577_p3 = scmp.lt.s32.totalorder %s786_s22, %s575_s24 }
  0x40   : > { %p572_p10 = pnand %p570_p8, %p556_p0  ;;  %p578_p7 = scmp.lt.s32.totalorder %s576_s25, %s569_s7 }
  0x42   : > { %p573_p13 = pneg %p572_p10  ;;  %p579_p9 = por %p578_p7, %p577_p3 }
  0x44   : > { %p580_p2 = pnand %p579_p9, %p573_p13 }
  0x46   : > { %583 = shalt.err (!%p580_p2)
}
  0x47   : > { %470 = dma.hbm_to_vmem [thread:$0]  (!%p782_p11), %s780_s27, 128, %s786_s22, %s124_s28  }
  0x48   : > { %p897_p5 = scmp.ne.s32.totalorder %s892_s17, 0 }
  0x49   : > { %s816_s20 = sand.u32 (!%p897_p5), 1, %s646_s10   ;;  %p898_p0 = scmp.ne.s32.totalorder (!%p897_p5), %s890_s15, 0 }
  0x4a   : > { %143 = sbr.rel (%p897_p5) target bundleno = 1320 (0x528), region = 28  ;;  %s425_s26 = sshll.u32 (!%p897_p5), %s816_s20, 3 }
  0x4b   : > { %s146_s19 = scalar_lea.sflag (!%p897_p5), [#allocation3], %s816_s20  ;;  %s149_s29 = scalar_lea.vmem (!%p897_p5), [#allocation2], %s425_s26 }
  0x51   : > { %629 = dma.done.wait (%p898_p0), %s146_s19, 128  }
  0x52   : > { %631 = vsyncadd (%p898_p0), %s146_s19, 4294967168  ;;  %p899_p11 = scmp.eq.s32.totalorder %s701_s13, 0 }
  0x54   : > { %633 = dma.done.wait (%p899_p11), [#allocation6], 512   ;;  %p900_p1 = pmov %p899_p11 }
  0x55   : > { %v660_v0 = vmov 0.0|0.0   ;;  %vm661_vm0 = vmmov 0   ;;  %v662_v1 = vmov 0.0   ;;  %v175_v2 = vld [vmem:[#allocation5] sm:$0xff]  ;;  %v176_v3 = vld [vmem:[#allocation5 + $0x8] sm:$0xff]  ;;  %v177_v4 = vld [vmem:[#allocation5 + $0x10] sm:$0xff]  ;;  %v253_v9 = vlaneseq }
  0x56   : > { %635 = vsyncadd (%p900_p1), [#allocation6], 4294966784  ;;  %449 = vmatprep.subr.bf16.mxu0 %v660_v0  ;;  %446 = vmatprep.mubr.msk.f32.mxu0 %vm661_vm0, %v662_v1  ;;  %v450_v5 = vpack.c.bf16 %v176_v3, %v175_v2  ;;  %v178_v6 = vld [vmem:[#allocation5 + $0x18] sm:$0xff]  ;;  %vm179_vm1 = vcmask 261120   ;;  %vm300_vm6 = vcmask 7168   ;;  %vm308_vm8 = vcmask 15360  }
  0x57   : > { %v453_v7 = vpack.c.bf16 %v178_v6, %v177_v4  ;;  %v174_v8 = vld [vmem:[%s149_s29] sm:$0xff]  ;;  %v254_v10 = vand.u32 127, %v253_v9  ;;  %s663_s15 = smov 2   ;;  %s430_s17 = sshll.u32 %s701_s13, 7  ;;  %vm321_vm10 = vcmask 31744  }
  0x58   : > { %451 = vmatpush3.bf16.msra.mxu0 %v450_v5  ;;  %s173_s27 = scalar_lea.vmem [#allocation7], %s425_s26  ;;  %s840_s30 = scalar_lea.hbm %s886_s2, %s430_s17 }
  0x59   : > { %452 = vmatprep.subr.bf16.mxu0 %v660_v0  ;;  %vm255_vm2 = vcmp.lt.s32.totalorder %v254_v10, 8  ;;  %s338_s22 = sshll.u32 %s173_s27, 4  ;;  %s325_s13 = scalar_lea.sflag [#allocation4], %s816_s20  ;;  %s842_s22 = int_to_ptr.vmem [resolvable:$true] %s338_s22 }
  0x5a   : > { %s584_s3 = scalar_lea.vmem %s842_s22, 128  ;;  %s664_s4 = smov [#allocation7]  }
  0x5b   : > { %p585_p4 = scmp.ne.s32.totalorder %s842_s22, %s584_s3  ;;  %s588_s5 = sshll.u32 %s664_s4, 4  ;;  %s589_s5 = int_to_ptr.vmem [resolvable:$false] %s588_s5 }
  0x5c   : > { %454 = vmatpush3.bf16.msra.mxu0 %v453_v7  ;;  %s590_s6 = scalar_lea.vmem %s589_s5, 256  ;;  %p591_p10 = scmp.lt.s32.totalorder %s842_s22, %s589_s5 }
  0x5d   : > { %p586_p6 = pnand %p585_p4, %p771_p12  ;;  %p592_p13 = scmp.lt.s32.totalorder %s590_s6, %s584_s3 }
  0x5f   : > { %447 = vmatmul.mubr.msk.f32.vlgmr.msra.gmra.mrb[0].mxu0 %vm179_vm1, %v174_v8  ;;  %p587_p8 = pneg %p586_p6  ;;  %p593_p3 = por %p592_p13, %p591_p10 }
  0x61   : > { %p594_p7 = pnand %p593_p3, %p587_p8 }
 0x132   : > { %v249_v11 = vpop.f32.mrb[0].mxu0 }
 0x133   : > { %v256_v12 = vsel %vm255_vm2, %v249_v11, -1e+30  ;;  %v448_v13 = vpop.f32.mrb[1].mxu0 }
 0x134   : > { %257 = vmax.xlane.f32.xlu0 %v256_v12 }
 0x1c1   : > { %v258_v14 = vpop.xlane.xlu0 %257 }
 0x1c2   : > { %vm264_vm3 = vcmp.eq.f32.partialorder %v256_v12, %v258_v14  ;;  %v259_v22 = vsub.f32 %v256_v12, %v258_v14 }
 0x1c3   : > { %v265_v15 = vsel %vm264_vm3, %v254_v10, 1073741824 }
 0x1c4   : > { %v267_v16 = vshra.s32 %v265_v15, 16  ;;  %v266_v18 = vand.u32 65535, %v265_v15  ;;  %v260_v23 = vmul.f32 1.442695, %v259_v22 }
 0x1c6   : > { %v269_v17 = vcvt.s32.f32 %v267_v16  ;;  %v268_v20 = vcvt.s32.f32 %v266_v18  ;;  %518 = vpow2.f32 %v260_v23 }
 0x1c8   : > { %270 = vmin.xlane.f32.xlu0 %v269_v17 }
 0x1d0   : > { %v519_v30 = vpop.eup %518 }
 0x255   : > { %v271_v19 = vpop.xlane.xlu0 %270 }
 0x256   : > { %vm272_vm4 = vcmp.eq.f32.partialorder %v269_v17, %v271_v19  ;;  %v277_v24 = vcvt.f32.s32 %v271_v19 }
 0x257   : > { %v273_v21 = vsel %vm272_vm4, %v268_v20, inf }
 0x258   : > { %274 = vmin.xlane.f32.xlu1 %v273_v21  ;;  %v278_v26 = vshll.u32 %v277_v24, 16 }
 0x2e5   : > { %v275_v25 = vpop.xlane.xlu1 %274 }
 0x2e6   : > { %v276_v27 = vcvt.f32.s32 %v275_v25 }
 0x2e8   : > { %v279_v28 = vadd.s32 %v278_v26, %v276_v27 }
 0x2ea   : > { %vm280_vm5 = vcmp.eq.s32.totalorder %v254_v10, %v279_v28 }
 0x2eb   : > { %v281_v29 = vsel %vm280_vm5, -1e+30, %v256_v12 }
 0x2ec   : > { %282 = vmax.xlane.f32.xlu1 %v281_v29 }
 0x2f0   : > { %262 = vadd.xlane.f32.xlu1 %v519_v30 }
 0x379   : > { %v283_v31 = vpop.xlane.xlu1 %282 }
 0x37a   : > { %vm284_vm7 = vcmp.eq.f32.partialorder %v281_v29, %v283_v31  ;;  %v301_v32 = vsel %vm300_vm6, %v258_v14, %v283_v31 }
 0x37b   : > { %v285_v33 = vsel %vm284_vm7, %v254_v10, 1073741824  ;;  %v303_v34 = vsub.f32 %v301_v32, %v258_v14 }
 0x37c   : > { %v287_v35 = vshra.s32 %v285_v33, 16  ;;  %v286_v43 = vand.u32 65535, %v285_v33 }
 0x37d   : > { %v304_v36 = vmul.f32 1.442695, %v303_v34  ;;  %v263_v37 = vpop.xlane.xlu1 %262 }
 0x37e   : > { %520 = vrcp.f32 %v263_v37  ;;  %v289_v38 = vcvt.s32.f32 %v287_v35  ;;  %v288_v45 = vcvt.s32.f32 %v286_v43 }
 0x37f   : > { %522 = vpow2.f32 %v304_v36 }
 0x380   : > { %290 = vmin.xlane.f32.xlu0 %v289_v38 }
 0x388   : > { %v521_v39 = vpop.eup %520 }
 0x389   : > { %v523_v40 = vpop.eup %522 }
 0x38a   : > { %v307_v41 = vmul.f32 %v523_v40, %v521_v39 }
 0x38c   : > { %v309_v42 = vsel %vm308_vm8, %v307_v41, 0.0 }
 0x38d   : > { %310 = vadd.xlane.f32.xlu1 %v309_v42 }
 0x40d   : > { %v291_v44 = vpop.xlane.xlu0 %290 }
 0x40e   : > { %vm292_vm9 = vcmp.eq.f32.partialorder %v289_v38, %v291_v44  ;;  %v297_v47 = vcvt.f32.s32 %v291_v44 }
 0x40f   : > { %v293_v46 = vsel %vm292_vm9, %v288_v45, inf }
 0x410   : > { %294 = vmin.xlane.f32.xlu0 %v293_v46  ;;  %v298_v49 = vshll.u32 %v297_v47, 16 }
 0x41a   : > { %v311_v54 = vpop.xlane.xlu1 %310 }
 0x41b   : > { %v312_v55 = vadd.f32 1e-20, %v311_v54 }
 0x41d   : > { %524 = vrcp.f32 %v312_v55 }
 0x427   : > { %v525_v56 = vpop.eup %524 }
 0x428   : > { %v314_v57 = vmul.f32 %v525_v56, %v307_v41 }
 0x49d   : > { %v295_v48 = vpop.xlane.xlu0 %294 }
 0x49e   : > { %v296_v50 = vcvt.f32.s32 %v295_v48 }
 0x4a0   : > { %v299_v51 = vadd.s32 %v298_v49, %v296_v50 }
 0x4a2   : > { %v302_v52 = vsel %vm300_vm6, %v279_v28, %v299_v51 }
 0x4a3   : > { %v315_v53 = vcvt.s32.f32 %v302_v52 }
 0x4a5   : > { %317 = vrot.lane.b32.xlu0 %v315_v53, %s663_s15 }
 0x517   : > { %v318_v58 = vpop.permute.xlu0 %317 }
 0x518   : > { %v320_v59 = vsel %vm308_vm8, %v314_v57, %v318_v58 }
 0x519   : > { %v322_v60 = vsel %vm321_vm10, %v320_v59, 0.0 }
 0x51a   : > { %323 = vst [vmem:[%s173_s27] sm:$0xff] %v322_v60 }
 0x51b   : > { %597 = shalt.err (!%p594_p7)
}
 0x51c   : > { %s598_s7 = scalar_lea.hbm %s840_s30, 128  ;;  %s602_s25 = scalar_lea.hbm %s886_s2, 256 }
 0x51d   : > { %p599_p9 = scmp.ne.s32.totalorder %s840_s30, %s598_s7  ;;  %p603_p0 = scmp.lt.u32.totalorder %s840_s30, %s886_s2 }
 0x51e   : > { %p604_p11 = scmp.lt.u32.totalorder %s602_s25, %s598_s7  ;;  %p606_p4 = scmp.lt.u32.totalorder %s598_s7, %s840_s30 }
 0x51f   : > { %p600_p2 = pnand %p599_p9, %p771_p12 }
 0x520   : > { %p605_p1 = por %p604_p11, %p603_p0 }
 0x521   : > { %p601_p5 = pneg %p600_p2 }
 0x522   : > { %p607_p6 = por %p606_p4, %p605_p1 }
 0x524   : > { %p608_p8 = pnand %p607_p6, %p601_p5 }
 0x526   : > { %611 = shalt.err (!%p608_p8)
}
 0x527   : > { %461 = dma.vmem_to_hbm [thread:$0]  (%p771_p12), %s842_s22, 128, %s840_s30, %s325_s13  }
 0x528 PF: > { %s350_s19 = sand.u32 1, %s642_s9   ;;  %p901_p10 = scmp.ne.s32.totalorder %s891_s16, 0 }
 0x529   : > { %p902_p13 = scmp.ge.s32.totalorder %s654_s12, 2  ;;  %s351_s29 = scalar_lea.sflag [#allocation4], %s350_s19 }
 0x52b   : > { %p472_p3 = pnand %p902_p13, %p901_p10 }
 0x52d   : > { %637 = dma.done.wait (!%p472_p3), %s351_s29, 128  }
 0x52e   : > { %639 = vsyncadd (!%p472_p3), %s351_s29, 4294967168  ;;  %p16_p7 = scmp.ge.s32.totalorder %s736_s21, 4   ;;  %s903_s9 = smov %s646_s10 }
 0x52f   : > { %s904_s10 = smov %s650_s11  ;;  %s905_s11 = smov %s767_s8 }
 0x530   : > { %s906_s12 = smov %s736_s21  ;;  %18 = sbr.rel (!%p16_p7) target bundleno = 6 (0x6), region = 77 }
 0x537   :  { %356 = vsyncpa [#allocation3], 1 }
 0x538   :  { %358 = vsyncpa [#allocation3 + $0x1], 1 }
 0x539   :  { %359 = vsyncpa [#allocation6], 1 }
 0x53a   :  { %360 = vsyncpa [#allocation4], 1 }
 0x53b   :  { %362 = vsyncpa [#allocation4 + $0x1], 1 }

</bundles_post_ra>
